<compile_context>
chip_gen: v5e
topology: v5e:2x2
jax: 0.10.0
libtpu: 0.0.40
codegen_flags: <defaults>
</compile_context>

<pallas_src>
import functools

import jax
import jax.numpy as jnp
from jax.experimental import pallas as pl
from jax.experimental.pallas import tpu as pltpu


# ---------------------------------------------------------------------------
# Kernels
# ---------------------------------------------------------------------------
def _ffn_kernel_acc_in_out(x_ref, w1_ref, b1_ref, w2_ref, b2_ref, o_ref):
    """f32-output path: accumulate fc2 partials directly into the output tile."""
    k = pl.program_id(1)

    @pl.when(k == 0)
    def _init():
        o_ref[...] = jnp.zeros_like(o_ref)

    # fc1 K-slice: [tm,H] @ [H,tk] -> [tm,tk], f32 accumulation on the MXU.
    h = jnp.dot(x_ref[...], w1_ref[...], preferred_element_type=jnp.float32)
    h = jnp.maximum(h + b1_ref[...], 0.0)          # bias + ReLU in f32 (VPU)

    # fc2 partial product, accumulated in-place in the f32 output tile
    # (keeps the += form so v7x's MRB in-place accumulate can be targeted).
    o_ref[...] += jnp.dot(h.astype(w2_ref.dtype), w2_ref[...],
                          preferred_element_type=jnp.float32)

    @pl.when(k == pl.num_programs(1) - 1)
    def _finalize():
        o_ref[...] += b2_ref[...]                  # b2 added exactly once


def _ffn_kernel_scratch_acc(x_ref, w1_ref, b1_ref, w2_ref, b2_ref, o_ref, acc_ref):
    """Non-f32-output path: f32 accumulator scratch, single cast in epilogue."""
    k = pl.program_id(1)

    @pl.when(k == 0)
    def _init():
        acc_ref[...] = jnp.zeros_like(acc_ref)

    h = jnp.dot(x_ref[...], w1_ref[...], preferred_element_type=jnp.float32)
    h = jnp.maximum(h + b1_ref[...], 0.0)
    acc_ref[...] += jnp.dot(h.astype(w2_ref.dtype), w2_ref[...],
                            preferred_element_type=jnp.float32)

    @pl.when(k == pl.num_programs(1) - 1)
    def _finalize():
        o_ref[...] = (acc_ref[...] + b2_ref[...]).astype(o_ref.dtype)


# ---------------------------------------------------------------------------
# Tiling / budgeting helpers
# ---------------------------------------------------------------------------
def _vmem_capacity_bytes():
    """Per-core VMEM capacity (128 MiB v5e/v6e, 64 MiB v7x); safe fallback."""
    try:
        info = pltpu.get_tpu_info()
        for name in ("vmem_capacity_bytes", "vmem_size_bytes", "vmem_bytes"):
            cap = getattr(info, name, None)
            if cap:
                return int(cap)
    except Exception:
        pass
    return 128 << 20


def _round_up(v, m):
    return ((v + m - 1) // m) * m


def _select_tiles(m_pad, h, h4_pad, isz, osz, use_scratch, vmem_budget):
    """Pick (tm, tk) so the double-buffered working set fits the VMEM budget."""
    # Prefer tk multiples of 256 to fill the 256-wide MXUs on v6e/v7x.
    tk_opts = [c for c in (512, 256, 128) if h4_pad % c == 0] or [h4_pad]
    tm_cands = (2048, 1024, 512, 256, 128, 64, 32, 16, 8)

    def bytes_needed(tm, tk):
        return (2 * tm * h * isz                 # x tile, double-buffered
                + 2 * (h * tk + tk * h) * isz    # w1 / w2 K-slices, double-buffered
                + 2 * (tk + h) * 4               # bias slices, double-buffered
                + 2 * tm * h * osz               # output tile, double-buffered
                + (tm * h * 4 if use_scratch else 0))   # f32 accumulator scratch

    for tk in tk_opts:
        fits = [c for c in tm_cands
                if m_pad % c == 0 and bytes_needed(c, tk) <= vmem_budget]
        if not fits:
            continue
        # Largest tm that still leaves >= 2 token tiles (keeps both v7x
        # TensorCores fed along the "parallel" axis); else largest that fits.
        multi = [c for c in fits if m_pad // c >= 2]
        tm = multi[0] if multi else fits[0]
        return tm, tk
    # Last-resort fallback for extreme hidden sizes: smallest legal tiling.
    tk = tk_opts[-1]
    tm = 8 if m_pad % 8 == 0 else m_pad
    return tm, tk


# ---------------------------------------------------------------------------
# Wrapper
# ---------------------------------------------------------------------------
@functools.partial(jax.jit, static_argnames=("mxu_dtype",))
def feed_forward(x, w1_t, b1, w2_t, b2, *, mxu_dtype=jnp.bfloat16):
    """FeedForward forward pass: fc2(relu(fc1(x))).

    x    : [..., H]
    w1_t : [H, 4H]   (fc1 weight pre-transposed to [in, out])
    b1   : [4H]
    w2_t : [4H, H]   (fc2 weight pre-transposed to [in, out])
    b2   : [H]
    """
    H = x.shape[-1]
    H4 = w1_t.shape[-1]
    lead = x.shape[:-1]
    out_dtype = x.dtype

    x2 = x.reshape(-1, H)                          # [M, H] tokens on sublanes
    M = x2.shape[0]

    # ---- padding: never tiny / odd tiles (costs <1% FLOPs, keeps fast path) ----
    m_base = 256 if M >= 256 else (128 if M >= 128 else 8)
    M_pad = _round_up(M, m_base)
    H4_pad = _round_up(H4, 128)

    isz = jnp.dtype(mxu_dtype).itemsize
    osz = jnp.dtype(out_dtype).itemsize
    use_scratch = jnp.dtype(out_dtype) != jnp.dtype(jnp.float32)

    # ---- generation-aware VMEM budget ----
    vmem_cap = _vmem_capacity_bytes()
    headroom = max(12 << 20, vmem_cap // 8)        # compiler scratch / spills
    vmem_budget = int(vmem_cap - headroom)         # ~112 MiB v5e/v6e, ~52 MiB v7x

    tm, tk = _select_tiles(M_pad, H, H4_pad, isz, osz, use_scratch, vmem_budget)
    grid = (M_pad // tm, H4_pad // tk)

    # ---- operand prep: bf16 MXU operands, f32 biases, zero padding ----
    x_mxu = x2.astype(mxu_dtype)
    if M_pad != M:
        x_mxu = jnp.pad(x_mxu, ((0, M_pad - M), (0, 0)))
    w1_mxu = w1_t.astype(mxu_dtype)
    w2_mxu = w2_t.astype(mxu_dtype)
    b1_2d = b1.reshape(1, H4).astype(jnp.float32)
    if H4_pad != H4:
        # Zero-padded fc1 columns produce ReLU(0)=0, contributing nothing to fc2.
        w1_mxu = jnp.pad(w1_mxu, ((0, 0), (0, H4_pad - H4)))
        w2_mxu = jnp.pad(w2_mxu, ((0, H4_pad - H4), (0, 0)))
        b1_2d = jnp.pad(b1_2d, ((0, 0), (0, H4_pad - H4)))
    b2_2d = b2.reshape(1, H).astype(jnp.float32)

    # Honest HBM traffic: weights are re-streamed once per token tile.
    cost = pl.CostEstimate(
        flops=4 * M_pad * H * H4_pad,              # 2*M*H*4H (fc1) + 2*M*4H*H (fc2)
        transcendentals=0,
        bytes_accessed=(M_pad * H * isz
                        + grid[0] * (H * H4_pad + H4_pad * H) * isz
                        + (H4_pad + H) * 4
                        + M_pad * H * osz),
    )

    kernel = _ffn_kernel_scratch_acc if use_scratch else _ffn_kernel_acc_in_out
    scratch_shapes = [pltpu.VMEM((tm, H), jnp.float32)] if use_scratch else []

    # NOTE: pipeline_mode=pl.Buffered(3) on w1/w2 deliberately NOT applied —
    # only worth it once a profile shows exposed per-slice DMA after the
    # larger-tm change, and it costs VMEM that is tight on v7x.
    out = pl.pallas_call(
        kernel,
        out_shape=jax.ShapeDtypeStruct((M_pad, H), out_dtype),
        grid_spec=pltpu.PrefetchScalarGridSpec(
            num_scalar_prefetch=0,
            grid=grid,
            in_specs=[
                pl.BlockSpec((tm, H), lambda i, k: (i, 0)),   # x tile (resident over k)
                pl.BlockSpec((H, tk), lambda i, k: (0, k)),   # w1 K-slice
                pl.BlockSpec((1, tk), lambda i, k: (0, k)),   # b1 K-slice
                pl.BlockSpec((tk, H), lambda i, k: (k, 0)),   # w2 K-slice
                pl.BlockSpec((1, H), lambda i, k: (0, 0)),    # b2 (epilogue only)
            ],
            out_specs=pl.BlockSpec((tm, H), lambda i, k: (i, 0)),  # lane-dense, full H
            scratch_shapes=scratch_shapes,
        ),
        compiler_params=pltpu.CompilerParams(
            dimension_semantics=("parallel", "arbitrary"),
            vmem_limit_bytes=vmem_budget,
        ),
        cost_estimate=cost,
    )(x_mxu, w1_mxu, b1_2d, w2_mxu, b2_2d)

    if M_pad != M:
        out = out[:M]
    return out.reshape(*lead, H)


def _ref_feed_forward(x, w1, b1, w2, b2):
    h = jnp.maximum(x @ w1.T + b1, 0.0)
    return h @ w2.T + b2


if __name__ == "__main__":
    key = jax.random.PRNGKey(0)
    batch, seq, hidden = 2, 8, 32
    H4 = hidden * 4

    k_x, k_w1, k_b1, k_w2, k_b2 = jax.random.split(key, 5)
    x = jax.random.normal(k_x, (batch, seq, hidden), dtype=jnp.float32)

    # Synthetic nn.Linear-shaped parameters (fc1: [4H, H], fc2: [H, 4H]).
    bound1 = 1.0 / (hidden ** 0.5)
    bound2 = 1.0 / (H4 ** 0.5)
    w1 = jax.random.uniform(k_w1, (H4, hidden), jnp.float32, -bound1, bound1)
    b1 = jax.random.uniform(k_b1, (H4,), jnp.float32, -bound1, bound1)
    w2 = jax.random.uniform(k_w2, (hidden, H4), jnp.float32, -bound2, bound2)
    b2 = jax.random.uniform(k_b2, (hidden,), jnp.float32, -bound2, bound2)

    # One-time weight layout conversion ([out,in] -> [in,out]), hoisted out of
    # the per-call hot path.
    w1_t = jnp.asarray(w1.T)   # [H, 4H]
    w2_t = jnp.asarray(w2.T)   # [4H, H]

    y_ref = _ref_feed_forward(x, w1, b1, w2, b2)

    # f32 MXU path (accumulate-in-output kernel): tight match vs f32 reference.
    y_f32 = jax.block_until_ready(
        feed_forward(x, w1_t, b1, w2_t, b2, mxu_dtype=jnp.float32))
    assert y_f32.shape == x.shape
    assert jnp.allclose(y_f32, y_ref, atol=1e-5, rtol=1e-5), "f32 kernel mismatch"

    # bf16 MXU operands, f32 output (default / production path).
    y_bf16 = jax.block_until_ready(feed_forward(x, w1_t, b1, w2_t, b2))
    assert y_bf16.shape == x.shape
    assert jnp.allclose(y_bf16, y_ref, atol=5e-2, rtol=5e-2), "bf16 kernel mismatch"

    # bf16 input/output path (exercises the f32-scratch accumulator kernel).
    y_b16io = jax.block_until_ready(
        feed_forward(x.astype(jnp.bfloat16), w1_t, b1, w2_t, b2))
    assert y_b16io.shape == x.shape and y_b16io.dtype == jnp.bfloat16
    assert jnp.allclose(y_b16io.astype(jnp.float32), y_ref, atol=1e-1, rtol=1e-1), \
        "bf16-io kernel mismatch"

    print("KERNEL_OK")
</pallas_src>

<mosaic_0001>
module attributes {stable_mosaic.version = 11 : i64} {
  func.func @_ffn_kernel_acc_in_out(%arg0: i32, %arg1: i32, %arg2: memref<8x32xf32, #tpu.memory_space<vmem>>, %arg3: memref<32x128xf32, #tpu.memory_space<vmem>>, %arg4: memref<1x128xf32, #tpu.memory_space<vmem>>, %arg5: memref<128x32xf32, #tpu.memory_space<vmem>>, %arg6: memref<1x32xf32, #tpu.memory_space<vmem>>, %arg7: memref<8x32xf32, #tpu.memory_space<vmem>>) attributes {dimension_semantics = [#tpu.dimension_semantics<parallel>, #tpu.dimension_semantics<arbitrary>], iteration_bounds = array<i64: 2, 1>, scalar_prefetch = 0 : i64, scratch_operands = 0 : i64, tpu.core_type = #tpu.core_type<tc>, window_params = [{transform_indices = @transform_0, window_bounds = array<i64: 8, 32>}, {transform_indices = @transform_1, window_bounds = array<i64: 32, 128>}, {transform_indices = @transform_2, window_bounds = array<i64: 1, 128>}, {transform_indices = @transform_3, window_bounds = array<i64: 128, 32>}, {pipeline_mode = #tpu.pipeline_mode<synchronous>, transform_indices = @transform_4, window_bounds = array<i64: 1, 32>}, {transform_indices = @transform_5, window_bounds = array<i64: 8, 32>}]} {
    %c0_i32 = arith.constant 0 : i32
    %0 = arith.cmpi eq, %arg1, %c0_i32 : i32
    %1 = arith.extui %0 : i1 to i32
    %c0_i32_0 = arith.constant 0 : i32
    %2 = arith.cmpi ne, %1, %c0_i32_0 : i32
    scf.if %2 {
      %cst_16 = arith.constant 0.000000e+00 : f32
      %19 = vector.broadcast %cst_16 : f32 to vector<8x32xf32>
      %c0_17 = arith.constant 0 : index
      %c0_18 = arith.constant 0 : index
      %20 = vector.load %arg7[%c0_17, %c0_18] : memref<8x32xf32, #tpu.memory_space<vmem>>, vector<8x32xf32>
      tpu.vector_store %arg7[%c0_17, %c0_18], %19 {strides = array<i32>} : memref<8x32xf32, #tpu.memory_space<vmem>>, vector<8x32xf32>,
    } else {
    }
    %c0 = arith.constant 0 : index
    %c0_1 = arith.constant 0 : index
    %3 = vector.load %arg2[%c0, %c0_1] : memref<8x32xf32, #tpu.memory_space<vmem>>, vector<8x32xf32>
    %c0_2 = arith.constant 0 : index
    %c0_3 = arith.constant 0 : index
    %4 = vector.load %arg3[%c0_2, %c0_3] : memref<32x128xf32, #tpu.memory_space<vmem>>, vector<32x128xf32>
    %cst = arith.constant dense<0.000000e+00> : vector<8x128xf32>
    %5 = tpu.matmul %3, %4, %cst {dimension_numbers = #tpu.dot_dimension_numbers<[1], [0], [0], [1], [0, 0, 1, 1], [], []>} : vector<8x32xf32>, vector<32x128xf32>, vector<8x128xf32> -> vector<8x128xf32>
    %c0_4 = arith.constant 0 : index
    %c0_5 = arith.constant 0 : index
    %6 = vector.load %arg4[%c0_4, %c0_5] : memref<1x128xf32, #tpu.memory_space<vmem>>, vector<1x128xf32>
    %7 = vector.broadcast %6 : vector<1x128xf32> to vector<8x128xf32>
    %8 = arith.addf %5, %7 : vector<8x128xf32>
    %cst_6 = arith.constant 0.000000e+00 : f32
    %9 = vector.broadcast %cst_6 : f32 to vector<8x128xf32>
    %10 = arith.maximumf %8, %9 : vector<8x128xf32>
    %c0_7 = arith.constant 0 : index
    %c0_8 = arith.constant 0 : index
    %11 = vector.load %arg7[%c0_7, %c0_8] : memref<8x32xf32, #tpu.memory_space<vmem>>, vector<8x32xf32>
    %c0_9 = arith.constant 0 : index
    %c0_10 = arith.constant 0 : index
    %12 = vector.load %arg5[%c0_9, %c0_10] : memref<128x32xf32, #tpu.memory_space<vmem>>, vector<128x32xf32>
    %cst_11 = arith.constant dense<0.000000e+00> : vector<8x32xf32>
    %13 = tpu.matmul %10, %12, %cst_11 {dimension_numbers = #tpu.dot_dimension_numbers<[1], [0], [0], [1], [0, 0, 1, 1], [], []>} : vector<8x128xf32>, vector<128x32xf32>, vector<8x32xf32> -> vector<8x32xf32>
    %14 = arith.addf %11, %13 : vector<8x32xf32>
    %c0_12 = arith.constant 0 : index
    %c0_13 = arith.constant 0 : index
    %15 = vector.load %arg7[%c0_12, %c0_13] : memref<8x32xf32, #tpu.memory_space<vmem>>, vector<8x32xf32>
    tpu.vector_store %arg7[%c0_12, %c0_13], %14 {strides = array<i32>} : memref<8x32xf32, #tpu.memory_space<vmem>>, vector<8x32xf32>,
    %c0_i32_14 = arith.constant 0 : i32
    %16 = arith.cmpi eq, %arg1, %c0_i32_14 : i32
    %17 = arith.extui %16 : i1 to i32
    %c0_i32_15 = arith.constant 0 : i32
    %18 = arith.cmpi ne, %17, %c0_i32_15 : i32
    scf.if %18 {
      %c0_16 = arith.constant 0 : index
      %c0_17 = arith.constant 0 : index
      %19 = vector.load %arg7[%c0_16, %c0_17] : memref<8x32xf32, #tpu.memory_space<vmem>>, vector<8x32xf32>
      %c0_18 = arith.constant 0 : index
      %c0_19 = arith.constant 0 : index
      %20 = vector.load %arg6[%c0_18, %c0_19] : memref<1x32xf32, #tpu.memory_space<vmem>>, vector<1x32xf32>
      %21 = vector.broadcast %20 : vector<1x32xf32> to vector<8x32xf32>
      %22 = arith.addf %19, %21 : vector<8x32xf32>
      %c0_20 = arith.constant 0 : index
      %c0_21 = arith.constant 0 : index
      %23 = vector.load %arg7[%c0_20, %c0_21] : memref<8x32xf32, #tpu.memory_space<vmem>>, vector<8x32xf32>
      tpu.vector_store %arg7[%c0_20, %c0_21], %22 {strides = array<i32>} : memref<8x32xf32, #tpu.memory_space<vmem>>, vector<8x32xf32>,
    } else {
    }
    return
  }
  func.func @transform_0(%arg0: i32, %arg1: i32) -> (i32, i32) {
    %c0_i32 = arith.constant 0 : i32
    %c0_i32_0 = arith.constant 0 : i32
    return %arg0, %c0_i32 : i32, i32
  }
  func.func @transform_1(%arg0: i32, %arg1: i32) -> (i32, i32) {
    %c0_i32 = arith.constant 0 : i32
    %c0_i32_0 = arith.constant 0 : i32
    return %c0_i32, %arg1 : i32, i32
  }
  func.func @transform_2(%arg0: i32, %arg1: i32) -> (i32, i32) {
    %c0_i32 = arith.constant 0 : i32
    %c0_i32_0 = arith.constant 0 : i32
    return %c0_i32, %arg1 : i32, i32
  }
  func.func @transform_3(%arg0: i32, %arg1: i32) -> (i32, i32) {
    %c0_i32 = arith.constant 0 : i32
    %c0_i32_0 = arith.constant 0 : i32
    return %arg1, %c0_i32 : i32, i32
  }
  func.func @transform_4(%arg0: i32, %arg1: i32) -> (i32, i32) {
    %c0_i32 = arith.constant 0 : i32
    %c0_i32_0 = arith.constant 0 : i32
    %c0_i32_1 = arith.constant 0 : i32
    return %c0_i32, %c0_i32_0 : i32, i32
  }
  func.func @transform_5(%arg0: i32, %arg1: i32) -> (i32, i32) {
    %c0_i32 = arith.constant 0 : i32
    %c0_i32_0 = arith.constant 0 : i32
    return %arg0, %c0_i32 : i32, i32
  }
}

</mosaic_0001>

<bundles_post_ra>
// kernel: feed_forward.1
= control target key start
LH: loop header
LB: loop body
LE: loop exit
PB: predicated region body
PF: predicated region fallthrough
CT: control target
= control target key end

     0   :  { %10 = vsyncpa [#allocation3], 0  ;;  %s854_s0 = inlined_call_operand.vmem [shape: f32[16,32], index: 0, kind: input, shape index: {}]   ;;  %s855_s1 = inlined_call_operand.vmem [shape: f32[32,128], index: 1, kind: input, shape index: {}]   ;;  %s856_s2 = inlined_call_operand.vmem [shape: f32[1,128], index: 2, kind: input, shape index: {}]   ;;  %s857_s3 = inlined_call_operand.vmem [shape: f32[128,32], index: 3, kind: input, shape index: {}]   ;;  %s858_s4 = inlined_call_operand.vmem [shape: f32[1,32], index: 4, kind: input, shape index: {}]   ;;  %s859_s5 = inlined_call_operand.hbm [shape: f32[16,32], index: 5, kind: output, shape index: {}]  }
   0x1   :  { %12 = vsyncpa [#allocation3 + $0x1], 0  ;;  %s683_s18 = smov 0   ;;  %s685_s19 = smov 0  }
   0x2   :  { %s687_s20 = smov 0   ;;  %s689_s21 = smov 0  }
   0x3   :  { %s691_s22 = smov 0   ;;  %s693_s23 = smov 0  }
   0x4 LB: > { %s499_s24 = sadd.s32 4294967295, %s650_s23   ;;  %s500_s25 = sadd.s32 4294967294, %s650_s23   ;;  %s650_s23 = sphi %s693_s23, %s18_s23   ;;  %s646_s22 = sphi %s691_s22, %s866_s22   ;;  %s642_s21 = sphi %s689_s21, %s865_s21   ;;  %s638_s20 = sphi %s687_s20, %s864_s20   ;;  %s634_s19 = sphi %s685_s19, %s863_s19   ;;  %s630_s18 = sphi %s683_s18, %s862_s18  }
   0x5   : > { %s30_s26 = sadd.s32 1, %s646_s22  ;;  %s162_s27 = sadd.s32 1, %s638_s20 }
   0x6   : > { %p32_p0 = scmp.ge.s32.totalorder %s30_s26, 2  ;;  %p172_p1 = scmp.ne.s32.totalorder %s638_s20, %s634_s19 }
   0x7   : > { %p173_p2 = scmp.eq.s32.totalorder %s499_s24, 1  ;;  %p178_p3 = scmp.ne.s32.totalorder %s634_s19, %s630_s18 }
   0x8   : > { %s868_s26 = smov (%p32_p0, %s30_s26), 0  ;;  %p179_p5 = scmp.eq.s32.totalorder %s500_s25, 1 }
   0x9   : > { %p723_p4 = por %p173_p2, %p172_p1  ;;  %s159_s29 = ssub.s32 %s646_s22, %s868_s26 }
   0xa   : > { %p506_p6 = scmp.ge.s32.totalorder %s650_s23, 1  ;;  %p160_p7 = scmp.eq.s32.totalorder %s159_s29, 0 }
   0xb   : > { %p730_p8 = por %p179_p5, %p178_p3  ;;  %p229_p9 = scmp.lt.s32.totalorder %s650_s23, 3 }
   0xc   : > { %s736_s6 = scalar_select %p160_p7, %s638_s20, %s162_s27  }
   0xd   : > { %p230_p10 = pnand %p506_p6, %p229_p9 }
   0xe   : > { %p268_p11 = scmp.lt.s32.totalorder (!%p230_p10), %s642_s21, 1  ;;  %s265_s16 = sand.u32 (!%p230_p10), 1, %s634_s19  }
   0xf   : > { %233 = sbr.rel (%p230_p10) target bundleno = 299 (0x12b), region = 40  ;;  %s507_s25 = sshll.u32 (!%p230_p10), %s265_s16, 3 }
  0x10   : > { %s267_s9 = scalar_lea.vmem (!%p230_p10), [#allocation2], %s507_s25  ;;  %s511_s12 = sshll.u32 (!%p230_p10), %s642_s21, 3 }
  0x11   : > { %s385_s15 = scalar_lea.hbm (!%p230_p10), %s859_s5, %s511_s12  ;;  %s387_s25 = sshll.u32 (!%p230_p10), %s267_s9, 4  ;;  %s388_s25 = int_to_ptr.vmem [resolvable:$true] %s387_s25 }
  0x12   : > { %s389_s27 = sshll.u32 (!%p230_p10), %s385_s15, 4  ;;  %s592_s11 = scalar_lea.hbm (!%p230_p10), %s859_s5, 16  ;;  %s390_s27 = int_to_ptr.hbm [resolvable:$true] %s389_s27 }
  0x13   : > { %s586_s29 = sshra.s32 (!%p230_p10), %s390_s27, 4  ;;  %s587_s29 = int_to_ptr.hbm [resolvable:$true] %s586_s29 }
  0x14   : > { %v295_v0 = vld [vmem:[%s855_s1 + $0x18] sm:$0xff]  ;;  %v294_v1 = vld [vmem:[%s855_s1 + $0x10] sm:$0xff]  ;;  %v293_v4 = vld [vmem:[%s855_s1 + $0x8] sm:$0xff]  ;;  %s269_s17 = scalar_select %p268_p11, %s642_s21, 1  ;;  %vm289_vm0 = vcmask 261120   ;;  %v652_v21 = vmov 0.0  }
  0x15   : > { %316 = vmatpush.msra.mxu0 %v295_v0  ;;  %v341_v2 = vld [vmem:[%s857_s3 + $0x78] sm:$0xff]  ;;  %v340_v3 = vld [vmem:[%s857_s3 + $0x70] sm:$0xff]  ;;  %v339_v5 = vld [vmem:[%s857_s3 + $0x68] sm:$0xff]  ;;  %290 = vst.msk [vmem:[%s267_s9] sm:$0xff] %vm289_vm0, %v652_v21  ;;  %s375_s21 = scalar_lea.sflag [#allocation3], %s265_s16  ;;  %p593_p1 = scmp.lt.s32.totalorder %s587_s29, %s859_s5 }
  0x16   : > { %342 = vmatpush.msra.mxu1 %v341_v2  ;;  %v292_v6 = vld [vmem:[%s855_s1] sm:$0xff]  ;;  %s508_s7 = sshll.u32 %s269_s17, 3  ;;  %v337_v9 = vld [vmem:[%s857_s3 + $0x58] sm:$0xff]  ;;  %v336_v10 = vld [vmem:[%s857_s3 + $0x50] sm:$0xff] }
  0x17   : > { %317 = vmatpush.msra.mxu0 %v294_v1  ;;  %s271_s10 = scalar_lea.vmem %s854_s0, %s508_s7  ;;  %v338_v7 = vld [vmem:[%s857_s3 + $0x60] sm:$0xff]  ;;  %v335_v11 = vld [vmem:[%s857_s3 + $0x48] sm:$0xff]  ;;  %v333_v13 = vld [vmem:[%s857_s3 + $0x38] sm:$0xff]  ;;  %s588_s7 = scalar_lea.hbm %s587_s29, 8 }
  0x18   : > { %343 = vmatpush.msra.mxu1 %v340_v3  ;;  %v291_v8 = vld [vmem:[%s271_s10] sm:$0xff]  ;;  %v332_v14 = vld [vmem:[%s857_s3 + $0x30] sm:$0xff]  ;;  %v331_v15 = vld [vmem:[%s857_s3 + $0x28] sm:$0xff]  ;;  %p589_p12 = scmp.ne.s32.totalorder %s587_s29, %s588_s7  ;;  %p594_p2 = scmp.lt.s32.totalorder %s592_s11, %s588_s7 }
  0x19   : > { %318 = vmatpush.msra.mxu0 %v293_v4  ;;  %v334_v12 = vld [vmem:[%s857_s3 + $0x40] sm:$0xff]  ;;  %v329_v17 = vld [vmem:[%s857_s3 + $0x18] sm:$0xff]  ;;  %v328_v18 = vld [vmem:[%s857_s3 + $0x10] sm:$0xff] }
  0x1a   : > { %344 = vmatpush.msra.mxu1 %v339_v5  ;;  %v330_v16 = vld [vmem:[%s857_s3 + $0x20] sm:$0xff]  ;;  %v327_v19 = vld [vmem:[%s857_s3 + $0x8] sm:$0xff]  ;;  %p590_p13 = pnand %p589_p12, %p723_p4  ;;  %p595_p3 = por %p594_p2, %p593_p1 }
  0x1b   : > { %319 = vmatpush.msra.mxu0 %v292_v6  ;;  %v326_v20 = vld [vmem:[%s857_s3] sm:$0xff] }
  0x1c   : > { %509 = vmatmul.msk.f32.vlgmr.msra.gmra.mxu0 %vm289_vm0, %v291_v8  ;;  %345 = vmatpush.msra.mxu1 %v338_v7  ;;  %v570_v22 = vld [vmem:[%s856_s2] ss:$0 sm:$0xff]  ;;  %p591_p0 = pneg %p590_p13 }
  0x1d   : > { %v325_v26 = vld [vmem:[%s267_s9] sm:$0xff] }
  0x1e   : > { %346 = vmatpush.msra.mxu1 %v337_v9  ;;  %v571_v29 = vld [vmem:[%s858_s4] ss:$0 sm:$0xff]  ;;  %p596_p5 = pnand %p595_p3, %p591_p0 }
  0x20   : > { %347 = vmatpush.msra.mxu1 %v336_v10 }
  0x22   : > { %348 = vmatpush.msra.mxu1 %v335_v11 }
  0x24   : > { %349 = vmatpush.msra.mxu1 %v334_v12 }
  0x26   : > { %350 = vmatpush.msra.mxu1 %v333_v13 }
  0x28   : > { %351 = vmatpush.msra.mxu1 %v332_v14 }
  0x2a   : > { %352 = vmatpush.msra.mxu1 %v331_v15 }
  0x2c   : > { %353 = vmatpush.msra.mxu1 %v330_v16 }
  0x2e   : > { %354 = vmatpush.msra.mxu1 %v329_v17 }
  0x30   : > { %355 = vmatpush.msra.mxu1 %v328_v18 }
  0x32   : > { %356 = vmatpush.msra.mxu1 %v327_v19 }
  0x34   : > { %357 = vmatpush.msra.mxu1 %v326_v20 }
  0x99   : > { %v321_v23 = vpop.f32.mrf.mxu0 }
  0x9a   : > { %v322_v24 = vadd.f32 %v570_v22, %v321_v23 }
  0x9c   : > { %v324_v25 = vmax.f32 %v322_v24, 0.0 }
  0x9e   : > { %358 = vmatmul.f32.vlgmr.msra.gmra.mxu1 %v324_v25 }
 0x11b   : > { %v359_v27 = vpop.f32.mrf.mxu1 }
 0x11c   : > { %v362_v28 = vadd.f32 %v359_v27, %v325_v26 }
 0x11e   : > { %363 = vst.msk [vmem:[%s267_s9] sm:$0xff] %vm289_vm0, %v362_v28 }
 0x125   : > { %v367_v30 = vld [vmem:[%s267_s9] sm:$0xff] }
 0x126   : > { %v372_v31 = vadd.f32 %v571_v29, %v367_v30 }
 0x128   : > { %373 = vst.msk [vmem:[%s267_s9] sm:$0xff] %vm289_vm0, %v372_v31 }
 0x129   : > { %599 = shalt.err (!%p596_p5)
}
 0x12a   : > { %514 = dma.vmem_to_hbm [thread:$0]  (%p723_p4), %s388_s25, 128, %s390_s27, %s375_s21  }
 0x12b PF: > { %p520_p6 = scmp.ge.s32.totalorder %s650_s23, 2  ;;  %s401_s16 = sand.u32 1, %s630_s18  }
 0x12c   : > { %s402_s9 = scalar_lea.sflag [#allocation3], %s401_s16 }
 0x12d   : > { %p517_p7 = pnand %p520_p6, %p730_p8 }
 0x12f   : > { %p518_p9 = pneg %p517_p7 }
 0x131   : > { %625 = dma.done.wait (%p518_p9), %s402_s9, 128  }
 0x132   : > { %627 = vsyncadd (%p518_p9), %s402_s9, 4294967168  ;;  %s18_s23 = sadd.s32 1, %s650_s23   ;;  %s862_s18 = smov %s634_s19 }
 0x133   : > { %p15_p10 = scmp.ge.s32.totalorder %s18_s23, 4   ;;  %s863_s19 = smov %s638_s20 }
 0x134   : > { %s864_s20 = smov %s736_s6  ;;  %s865_s21 = smov %s646_s22 }
 0x135   : > { %s866_s22 = smov %s868_s26  ;;  %17 = sbr.rel (!%p15_p10) target bundleno = 4 (0x4), region = 92 }
 0x13a   :  { %408 = vsyncpa [#allocation3], 1 }
 0x13b   :  { %410 = vsyncpa [#allocation3 + $0x1], 1 }

</bundles_post_ra>
